<compile_context>
chip_gen: v7x
topology: tpu7x:2x2x1
jax: 0.10.0
libtpu: 0.0.40
codegen_flags: <defaults>
</compile_context>

<pallas_src>
import functools
import math

import jax
import jax.numpy as jnp
import numpy as np
from jax.experimental import pallas as pl
from jax.experimental.pallas import tpu as pltpu


def style_token_kernel(ref_ref, wqk_ref, bs_ref, w2_ref, bo_ref, out_ref, *,
                       n_head):
    """GST multi-head attention for one batch tile.

    ref_ref : (tb, ref_dim)          f32  reference embeddings
    wqk_ref : (n_head, ref_dim, T)   bf16 folded Wq_h @ K_h^T * scale
    bs_ref  : (n_head, 1, T)         f32  folded bq_h @ K_h^T * scale
    w2_ref  : (n_head, T, n_feat)    bf16 folded V_h @ Wo_h
    bo_ref  : (1, n_feat)            f32  output bias
    out_ref : (tb, n_feat)           f32
    """
    ref_bf = ref_ref[...].astype(jnp.bfloat16)        # (tb, ref_dim)

    acc = None
    # Static unroll over heads (n_head = 4): each iteration is two tiny MXU
    # matmuls plus a row softmax; all slicing is on the leading (cheap) axis.
    for h in range(n_head):
        # Attention scores for head h (scale and query bias already folded in).
        s = jnp.dot(ref_bf, wqk_ref[h],
                    preferred_element_type=jnp.float32) + bs_ref[h]   # (tb, T)

        # Softmax over the token axis, in f32 on VPU/EUP.
        m = jnp.max(s, axis=-1, keepdims=True)
        e = jnp.exp(s - m)
        p = e * pl.reciprocal(jnp.sum(e, axis=-1, keepdims=True), approx=True)

        # Context + output projection for this head, pre-folded into W2[h].
        c = jnp.dot(p.astype(jnp.bfloat16), w2_ref[h],
                    preferred_element_type=jnp.float32)               # (tb, n_feat)
        acc = c if acc is None else acc + c

    out_ref[...] = (acc + bo_ref[...]).astype(out_ref.dtype)


def prepare_style_token_params(params, *, gst_heads, weight_dtype=jnp.bfloat16):
    """One-time parameter preparation (do at load time, NOT per call).

    Folds every input-independent piece of the forward pass (tanh(gst), the
    K/V projections, the score scale, and the output projection) into three
    small per-head tables.  All folding is done in float32; only the MXU
    operands are cast to bf16.
    """
    gst = jnp.tanh(params["gst_embs"].astype(jnp.float32))           # (T, d_k)
    wq_t, bq = params["wq_t"], params["bq"]                          # (ref_dim,n_feat),(1,n_feat)
    wk_t, bk = params["wk_t"], params["bk"]
    wv_t, bv = params["wv_t"], params["bv"]
    wo_t, bo = params["wo_t"], params["bo"]

    ref_dim, n_feat = wq_t.shape
    d_k = n_feat // gst_heads
    T = gst.shape[0]
    scale = 1.0 / math.sqrt(float(n_feat))          # PyTorch: 1/sqrt(d_k * h)

    k = gst @ wk_t + bk                                              # (T, n_feat)
    v = gst @ wv_t + bv                                              # (T, n_feat)

    kh = k.reshape(T, gst_heads, d_k)
    vh = v.reshape(T, gst_heads, d_k)
    wq_h = wq_t.reshape(ref_dim, gst_heads, d_k)
    bq_h = bq.reshape(1, gst_heads, d_k)
    wo_h = wo_t.reshape(gst_heads, d_k, n_feat)

    # Wqk[h] = Wq_h @ K_h^T * scale   -> (n_head, ref_dim, T)
    wqk = jnp.einsum("rhd,thd->hrt", wq_h, kh) * scale
    # bS[h]  = bq_h @ K_h^T * scale   -> (n_head, 1, T)
    bs = jnp.einsum("ohd,thd->hot", bq_h, kh) * scale
    # W2[h]  = V_h @ Wo_h             -> (n_head, T, n_feat)
    w2 = jnp.einsum("thd,hdn->htn", vh, wo_h)

    return dict(
        wqk=wqk.astype(weight_dtype),
        bs=bs.astype(jnp.float32),
        w2=w2.astype(weight_dtype),
        bo=bo.astype(jnp.float32),
    )


def style_token_layer(ref_embs, prepared, *, gst_heads, block_b=512):
    """ref_embs: (B, ref_embed_dim, 1)  ->  (B, gst_token_dim)."""
    wqk, bs, w2, bo = prepared["wqk"], prepared["bs"], prepared["w2"], prepared["bo"]

    n_head, ref_dim, T = wqk.shape
    n_feat = w2.shape[-1]
    assert n_head == gst_heads
    B = ref_embs.shape[0]

    # ref_embs.transpose(-1, -2) has seq length 1 -> just squeeze (layout glue).
    ref2d = jnp.squeeze(ref_embs, axis=-1).astype(jnp.float32)       # (B, ref_dim)

    tb = B if B <= block_b else block_b
    grid = (pl.cdiv(B, tb),)

    kernel = functools.partial(style_token_kernel, n_head=n_head)

    flops = n_head * (2 * B * ref_dim * T + 2 * B * T * n_feat)
    bytes_accessed = int(sum(int(x.size) * x.dtype.itemsize
                             for x in (ref2d, wqk, bs, w2, bo))
                         + B * n_feat * 4)

    return pl.pallas_call(
        kernel,
        out_shape=jax.ShapeDtypeStruct((B, n_feat), jnp.float32),
        grid_spec=pltpu.PrefetchScalarGridSpec(
            num_scalar_prefetch=0,
            grid=grid,
            in_specs=[
                pl.BlockSpec((tb, ref_dim), lambda i: (i, 0)),            # ref
                pl.BlockSpec((n_head, ref_dim, T), lambda i: (0, 0, 0)),  # Wqk
                pl.BlockSpec((n_head, 1, T), lambda i: (0, 0, 0)),        # bS
                pl.BlockSpec((n_head, T, n_feat), lambda i: (0, 0, 0)),   # W2
                pl.BlockSpec((1, n_feat), lambda i: (0, 0)),              # bo
            ],
            out_specs=pl.BlockSpec((tb, n_feat), lambda i: (i, 0)),
        ),
        compiler_params=pltpu.CompilerParams(
            dimension_semantics=("parallel",)),
        cost_estimate=pl.CostEstimate(
            flops=flops,
            transcendentals=B * T * n_head + B * n_head,
            bytes_accessed=bytes_accessed),
    )(ref2d, wqk, bs, w2, bo)


def _reference_jax(ref_embs, params, *, gst_heads):
    """Plain-JAX float32 replica of the PyTorch forward, for validation."""
    gst_embs = params["gst_embs"]
    n_feat = params["wq_t"].shape[1]
    d_k = n_feat // gst_heads
    B = ref_embs.shape[0]

    gst = jnp.tanh(gst_embs)                                    # (T, d_k)
    ref = jnp.transpose(ref_embs, (0, 2, 1))                    # (B, 1, ref_dim)

    q = ref @ params["wq_t"] + params["bq"]                     # (B, 1, n_feat)
    k = gst @ params["wk_t"] + params["bk"]                     # (T, n_feat)
    v = gst @ params["wv_t"] + params["bv"]                     # (T, n_feat)

    qh = q.reshape(B, 1, gst_heads, d_k).transpose(0, 2, 1, 3)  # (B, h, 1, d_k)
    kh = jnp.broadcast_to(k.reshape(1, -1, gst_heads, d_k),
                          (B, k.shape[0], gst_heads, d_k)).transpose(0, 2, 1, 3)
    vh = jnp.broadcast_to(v.reshape(1, -1, gst_heads, d_k),
                          (B, v.shape[0], gst_heads, d_k)).transpose(0, 2, 1, 3)

    score = qh @ jnp.swapaxes(kh, -1, -2) / math.sqrt(d_k * gst_heads)
    score = jax.nn.softmax(score, axis=-1)                      # dropout p=0.0 == identity
    o = score @ vh                                              # (B, h, 1, d_k)
    o = jnp.swapaxes(o, -1, -2).reshape(B, 1, -1)               # (B, 1, n_feat)
    o = o @ params["wo_t"] + params["bo"]
    return o[:, 0, :]


if __name__ == "__main__":
    # Module defaults (already small), small batch.
    B = 2
    ref_embed_dim = 128
    gst_tokens = 10
    gst_token_dim = 256
    gst_heads = 4
    d_k = gst_token_dim // gst_heads      # 64

    key = jax.random.PRNGKey(0)
    ks = jax.random.split(key, 10)

    def lin(kw, kb, in_dim, out_dim):
        bound = 1.0 / math.sqrt(in_dim)
        w = jax.random.uniform(kw, (out_dim, in_dim), jnp.float32, -bound, bound)
        b = jax.random.uniform(kb, (1, out_dim), jnp.float32, -bound, bound)
        return jnp.transpose(w), b          # store transposed: (in_dim, out_dim)

    wq_t, bq = lin(ks[0], ks[1], ref_embed_dim, gst_token_dim)
    wk_t, bk = lin(ks[2], ks[3], d_k, gst_token_dim)
    wv_t, bv = lin(ks[4], ks[5], d_k, gst_token_dim)
    wo_t, bo = lin(ks[6], ks[7], gst_token_dim, gst_token_dim)
    gst_embs = jax.random.normal(ks[8], (gst_tokens, d_k), jnp.float32)

    params = dict(gst_embs=gst_embs, wq_t=wq_t, bq=bq, wk_t=wk_t, bk=bk,
                  wv_t=wv_t, bv=bv, wo_t=wo_t, bo=bo)

    # Input in PyTorch layout: (B, ref_embed_dim, 1)
    ref_embs = jax.random.normal(ks[9], (B, ref_embed_dim, 1), jnp.float32)

    # One-time parameter folding (load time), then the per-call Pallas kernel.
    prepared = prepare_style_token_params(params, gst_heads=gst_heads)
    prepared = jax.tree_util.tree_map(jax.block_until_ready, prepared)

    out = style_token_layer(ref_embs, prepared, gst_heads=gst_heads)
    out = jax.block_until_ready(out)

    ref_out = _reference_jax(ref_embs, params, gst_heads=gst_heads)
    # Tolerance relaxed vs. the pure-f32 reference: the folded weight tables and
    # MXU operands are bf16 (f32 accumulation); observed error is ~1e-3.
    np.testing.assert_allclose(np.asarray(out), np.asarray(ref_out),
                               rtol=2e-2, atol=2e-2)
    assert out.shape == (B, gst_token_dim)
    print("KERNEL_OK")
</pallas_src>

<mosaic_0001>
module attributes {stable_mosaic.version = 11 : i64} {
  func.func @style_token_kernel(%arg0: i32, %arg1: memref<2x128xf32, #tpu.memory_space<vmem>>, %arg2: memref<4x128x10xbf16, #tpu.memory_space<vmem>>, %arg3: memref<4x1x10xf32, #tpu.memory_space<vmem>>, %arg4: memref<4x10x256xbf16, #tpu.memory_space<vmem>>, %arg5: memref<1x256xf32, #tpu.memory_space<vmem>>, %arg6: memref<2x256xf32, #tpu.memory_space<vmem>>) attributes {dimension_semantics = [#tpu.dimension_semantics<parallel>], iteration_bounds = array<i64: 1>, scalar_prefetch = 0 : i64, scratch_operands = 0 : i64, tpu.core_type = #tpu.core_type<tc>, window_params = [{transform_indices = @transform_0, window_bounds = array<i64: 2, 128>}, {pipeline_mode = #tpu.pipeline_mode<synchronous>, transform_indices = @transform_1, window_bounds = array<i64: 4, 128, 10>}, {pipeline_mode = #tpu.pipeline_mode<synchronous>, transform_indices = @transform_2, window_bounds = array<i64: 4, 1, 10>}, {pipeline_mode = #tpu.pipeline_mode<synchronous>, transform_indices = @transform_3, window_bounds = array<i64: 4, 10, 256>}, {pipeline_mode = #tpu.pipeline_mode<synchronous>, transform_indices = @transform_4, window_bounds = array<i64: 1, 256>}, {transform_indices = @transform_5, window_bounds = array<i64: 2, 256>}]} {
    %c0 = arith.constant 0 : index
    %c0_0 = arith.constant 0 : index
    %0 = vector.load %arg1[%c0, %c0_0] : memref<2x128xf32, #tpu.memory_space<vmem>>, vector<2x128xf32>
    %1 = arith.truncf %0 : vector<2x128xf32> to vector<2x128xbf16>
    %c0_1 = arith.constant 0 : index
    %c0_2 = arith.constant 0 : index
    %c0_3 = arith.constant 0 : index
    %2 = vector.load %arg2[%c0_1, %c0_2, %c0_3] : memref<4x128x10xbf16, #tpu.memory_space<vmem>>, vector<1x128x10xbf16>
    %3 = vector.shape_cast %2 : vector<1x128x10xbf16> to vector<128x10xbf16>
    %cst = arith.constant dense<0.000000e+00> : vector<2x10xf32>
    %4 = tpu.matmul %1, %3, %cst {dimension_numbers = #tpu.dot_dimension_numbers<[1], [0], [0], [1], [0, 0, 1, 1], [], []>} : vector<2x128xbf16>, vector<128x10xbf16>, vector<2x10xf32> -> vector<2x10xf32>
    %c0_4 = arith.constant 0 : index
    %c0_5 = arith.constant 0 : index
    %c0_6 = arith.constant 0 : index
    %5 = vector.load %arg3[%c0_4, %c0_5, %c0_6] : memref<4x1x10xf32, #tpu.memory_space<vmem>>, vector<1x1x10xf32>
    %6 = vector.shape_cast %5 : vector<1x1x10xf32> to vector<1x10xf32>
    %7 = vector.broadcast %6 : vector<1x10xf32> to vector<2x10xf32>
    %8 = arith.addf %4, %7 : vector<2x10xf32>
    %cst_7 = arith.constant dense<0xFF800000> : vector<2xf32>
    %9 = vector.multi_reduction <maximumf>, %8, %cst_7 [1] : vector<2x10xf32> to vector<2xf32>
    %10 = vector.shape_cast %9 : vector<2xf32> to vector<2x1xf32>
    %11 = vector.broadcast %10 : vector<2x1xf32> to vector<2x10xf32>
    %12 = arith.subf %8, %11 : vector<2x10xf32>
    %13 = math.exp %12 : vector<2x10xf32>
    %cst_8 = arith.constant dense<0.000000e+00> : vector<2xf32>
    %14 = vector.multi_reduction <add>, %13, %cst_8 [1] : vector<2x10xf32> to vector<2xf32>
    %15 = vector.shape_cast %14 : vector<2xf32> to vector<2x1xf32>
    %16 = tpu.reciprocal %15 {approx = true} : vector<2x1xf32> -> vector<2x1xf32>
    %17 = vector.broadcast %16 : vector<2x1xf32> to vector<2x10xf32>
    %18 = arith.mulf %13, %17 : vector<2x10xf32>
    %19 = arith.truncf %18 : vector<2x10xf32> to vector<2x10xbf16>
    %c0_9 = arith.constant 0 : index
    %c0_10 = arith.constant 0 : index
    %c0_11 = arith.constant 0 : index
    %20 = vector.load %arg4[%c0_9, %c0_10, %c0_11] : memref<4x10x256xbf16, #tpu.memory_space<vmem>>, vector<1x10x256xbf16>
    %21 = vector.shape_cast %20 : vector<1x10x256xbf16> to vector<10x256xbf16>
    %cst_12 = arith.constant dense<0.000000e+00> : vector<2x256xf32>
    %22 = tpu.matmul %19, %21, %cst_12 {dimension_numbers = #tpu.dot_dimension_numbers<[1], [0], [0], [1], [0, 0, 1, 1], [], []>} : vector<2x10xbf16>, vector<10x256xbf16>, vector<2x256xf32> -> vector<2x256xf32>
    %c1 = arith.constant 1 : index
    %c0_13 = arith.constant 0 : index
    %c0_14 = arith.constant 0 : index
    %23 = vector.load %arg2[%c1, %c0_13, %c0_14] : memref<4x128x10xbf16, #tpu.memory_space<vmem>>, vector<1x128x10xbf16>
    %24 = vector.shape_cast %23 : vector<1x128x10xbf16> to vector<128x10xbf16>
    %cst_15 = arith.constant dense<0.000000e+00> : vector<2x10xf32>
    %25 = tpu.matmul %1, %24, %cst_15 {dimension_numbers = #tpu.dot_dimension_numbers<[1], [0], [0], [1], [0, 0, 1, 1], [], []>} : vector<2x128xbf16>, vector<128x10xbf16>, vector<2x10xf32> -> vector<2x10xf32>
    %c1_16 = arith.constant 1 : index
    %c0_17 = arith.constant 0 : index
    %c0_18 = arith.constant 0 : index
    %26 = vector.load %arg3[%c1_16, %c0_17, %c0_18] : memref<4x1x10xf32, #tpu.memory_space<vmem>>, vector<1x1x10xf32>
    %27 = vector.shape_cast %26 : vector<1x1x10xf32> to vector<1x10xf32>
    %28 = vector.broadcast %27 : vector<1x10xf32> to vector<2x10xf32>
    %29 = arith.addf %25, %28 : vector<2x10xf32>
    %cst_19 = arith.constant dense<0xFF800000> : vector<2xf32>
    %30 = vector.multi_reduction <maximumf>, %29, %cst_19 [1] : vector<2x10xf32> to vector<2xf32>
    %31 = vector.shape_cast %30 : vector<2xf32> to vector<2x1xf32>
    %32 = vector.broadcast %31 : vector<2x1xf32> to vector<2x10xf32>
    %33 = arith.subf %29, %32 : vector<2x10xf32>
    %34 = math.exp %33 : vector<2x10xf32>
    %cst_20 = arith.constant dense<0.000000e+00> : vector<2xf32>
    %35 = vector.multi_reduction <add>, %34, %cst_20 [1] : vector<2x10xf32> to vector<2xf32>
    %36 = vector.shape_cast %35 : vector<2xf32> to vector<2x1xf32>
    %37 = tpu.reciprocal %36 {approx = true} : vector<2x1xf32> -> vector<2x1xf32>
    %38 = vector.broadcast %37 : vector<2x1xf32> to vector<2x10xf32>
    %39 = arith.mulf %34, %38 : vector<2x10xf32>
    %40 = arith.truncf %39 : vector<2x10xf32> to vector<2x10xbf16>
    %c1_21 = arith.constant 1 : index
    %c0_22 = arith.constant 0 : index
    %c0_23 = arith.constant 0 : index
    %41 = vector.load %arg4[%c1_21, %c0_22, %c0_23] : memref<4x10x256xbf16, #tpu.memory_space<vmem>>, vector<1x10x256xbf16>
    %42 = vector.shape_cast %41 : vector<1x10x256xbf16> to vector<10x256xbf16>
    %cst_24 = arith.constant dense<0.000000e+00> : vector<2x256xf32>
    %43 = tpu.matmul %40, %42, %cst_24 {dimension_numbers = #tpu.dot_dimension_numbers<[1], [0], [0], [1], [0, 0, 1, 1], [], []>} : vector<2x10xbf16>, vector<10x256xbf16>, vector<2x256xf32> -> vector<2x256xf32>
    %44 = arith.addf %22, %43 : vector<2x256xf32>
    %c2 = arith.constant 2 : index
    %c0_25 = arith.constant 0 : index
    %c0_26 = arith.constant 0 : index
    %45 = vector.load %arg2[%c2, %c0_25, %c0_26] : memref<4x128x10xbf16, #tpu.memory_space<vmem>>, vector<1x128x10xbf16>
    %46 = vector.shape_cast %45 : vector<1x128x10xbf16> to vector<128x10xbf16>
    %cst_27 = arith.constant dense<0.000000e+00> : vector<2x10xf32>
    %47 = tpu.matmul %1, %46, %cst_27 {dimension_numbers = #tpu.dot_dimension_numbers<[1], [0], [0], [1], [0, 0, 1, 1], [], []>} : vector<2x128xbf16>, vector<128x10xbf16>, vector<2x10xf32> -> vector<2x10xf32>
    %c2_28 = arith.constant 2 : index
    %c0_29 = arith.constant 0 : index
    %c0_30 = arith.constant 0 : index
    %48 = vector.load %arg3[%c2_28, %c0_29, %c0_30] : memref<4x1x10xf32, #tpu.memory_space<vmem>>, vector<1x1x10xf32>
    %49 = vector.shape_cast %48 : vector<1x1x10xf32> to vector<1x10xf32>
    %50 = vector.broadcast %49 : vector<1x10xf32> to vector<2x10xf32>
    %51 = arith.addf %47, %50 : vector<2x10xf32>
    %cst_31 = arith.constant dense<0xFF800000> : vector<2xf32>
    %52 = vector.multi_reduction <maximumf>, %51, %cst_31 [1] : vector<2x10xf32> to vector<2xf32>
    %53 = vector.shape_cast %52 : vector<2xf32> to vector<2x1xf32>
    %54 = vector.broadcast %53 : vector<2x1xf32> to vector<2x10xf32>
    %55 = arith.subf %51, %54 : vector<2x10xf32>
    %56 = math.exp %55 : vector<2x10xf32>
    %cst_32 = arith.constant dense<0.000000e+00> : vector<2xf32>
    %57 = vector.multi_reduction <add>, %56, %cst_32 [1] : vector<2x10xf32> to vector<2xf32>
    %58 = vector.shape_cast %57 : vector<2xf32> to vector<2x1xf32>
    %59 = tpu.reciprocal %58 {approx = true} : vector<2x1xf32> -> vector<2x1xf32>
    %60 = vector.broadcast %59 : vector<2x1xf32> to vector<2x10xf32>
    %61 = arith.mulf %56, %60 : vector<2x10xf32>
    %62 = arith.truncf %61 : vector<2x10xf32> to vector<2x10xbf16>
    %c2_33 = arith.constant 2 : index
    %c0_34 = arith.constant 0 : index
    %c0_35 = arith.constant 0 : index
    %63 = vector.load %arg4[%c2_33, %c0_34, %c0_35] : memref<4x10x256xbf16, #tpu.memory_space<vmem>>, vector<1x10x256xbf16>
    %64 = vector.shape_cast %63 : vector<1x10x256xbf16> to vector<10x256xbf16>
    %cst_36 = arith.constant dense<0.000000e+00> : vector<2x256xf32>
    %65 = tpu.matmul %62, %64, %cst_36 {dimension_numbers = #tpu.dot_dimension_numbers<[1], [0], [0], [1], [0, 0, 1, 1], [], []>} : vector<2x10xbf16>, vector<10x256xbf16>, vector<2x256xf32> -> vector<2x256xf32>
    %66 = arith.addf %44, %65 : vector<2x256xf32>
    %c3 = arith.constant 3 : index
    %c0_37 = arith.constant 0 : index
    %c0_38 = arith.constant 0 : index
    %67 = vector.load %arg2[%c3, %c0_37, %c0_38] : memref<4x128x10xbf16, #tpu.memory_space<vmem>>, vector<1x128x10xbf16>
    %68 = vector.shape_cast %67 : vector<1x128x10xbf16> to vector<128x10xbf16>
    %cst_39 = arith.constant dense<0.000000e+00> : vector<2x10xf32>
    %69 = tpu.matmul %1, %68, %cst_39 {dimension_numbers = #tpu.dot_dimension_numbers<[1], [0], [0], [1], [0, 0, 1, 1], [], []>} : vector<2x128xbf16>, vector<128x10xbf16>, vector<2x10xf32> -> vector<2x10xf32>
    %c3_40 = arith.constant 3 : index
    %c0_41 = arith.constant 0 : index
    %c0_42 = arith.constant 0 : index
    %70 = vector.load %arg3[%c3_40, %c0_41, %c0_42] : memref<4x1x10xf32, #tpu.memory_space<vmem>>, vector<1x1x10xf32>
    %71 = vector.shape_cast %70 : vector<1x1x10xf32> to vector<1x10xf32>
    %72 = vector.broadcast %71 : vector<1x10xf32> to vector<2x10xf32>
    %73 = arith.addf %69, %72 : vector<2x10xf32>
    %cst_43 = arith.constant dense<0xFF800000> : vector<2xf32>
    %74 = vector.multi_reduction <maximumf>, %73, %cst_43 [1] : vector<2x10xf32> to vector<2xf32>
    %75 = vector.shape_cast %74 : vector<2xf32> to vector<2x1xf32>
    %76 = vector.broadcast %75 : vector<2x1xf32> to vector<2x10xf32>
    %77 = arith.subf %73, %76 : vector<2x10xf32>
    %78 = math.exp %77 : vector<2x10xf32>
    %cst_44 = arith.constant dense<0.000000e+00> : vector<2xf32>
    %79 = vector.multi_reduction <add>, %78, %cst_44 [1] : vector<2x10xf32> to vector<2xf32>
    %80 = vector.shape_cast %79 : vector<2xf32> to vector<2x1xf32>
    %81 = tpu.reciprocal %80 {approx = true} : vector<2x1xf32> -> vector<2x1xf32>
    %82 = vector.broadcast %81 : vector<2x1xf32> to vector<2x10xf32>
    %83 = arith.mulf %78, %82 : vector<2x10xf32>
    %84 = arith.truncf %83 : vector<2x10xf32> to vector<2x10xbf16>
    %c3_45 = arith.constant 3 : index
    %c0_46 = arith.constant 0 : index
    %c0_47 = arith.constant 0 : index
    %85 = vector.load %arg4[%c3_45, %c0_46, %c0_47] : memref<4x10x256xbf16, #tpu.memory_space<vmem>>, vector<1x10x256xbf16>
    %86 = vector.shape_cast %85 : vector<1x10x256xbf16> to vector<10x256xbf16>
    %cst_48 = arith.constant dense<0.000000e+00> : vector<2x256xf32>
    %87 = tpu.matmul %84, %86, %cst_48 {dimension_numbers = #tpu.dot_dimension_numbers<[1], [0], [0], [1], [0, 0, 1, 1], [], []>} : vector<2x10xbf16>, vector<10x256xbf16>, vector<2x256xf32> -> vector<2x256xf32>
    %88 = arith.addf %66, %87 : vector<2x256xf32>
    %c0_49 = arith.constant 0 : index
    %c0_50 = arith.constant 0 : index
    %89 = vector.load %arg5[%c0_49, %c0_50] : memref<1x256xf32, #tpu.memory_space<vmem>>, vector<1x256xf32>
    %90 = vector.broadcast %89 : vector<1x256xf32> to vector<2x256xf32>
    %91 = arith.addf %88, %90 : vector<2x256xf32>
    %c0_51 = arith.constant 0 : index
    %c0_52 = arith.constant 0 : index
    %92 = vector.load %arg6[%c0_51, %c0_52] : memref<2x256xf32, #tpu.memory_space<vmem>>, vector<2x256xf32>
    tpu.vector_store %arg6[%c0_51, %c0_52], %91 {strides = array<i32>} : memref<2x256xf32, #tpu.memory_space<vmem>>, vector<2x256xf32>,
    return
  }
  func.func @transform_0(%arg0: i32) -> (i32, i32) {
    %c0_i32 = arith.constant 0 : i32
    %c0_i32_0 = arith.constant 0 : i32
    return %arg0, %c0_i32 : i32, i32
  }
  func.func @transform_1(%arg0: i32) -> (i32, i32, i32) {
    %c0_i32 = arith.constant 0 : i32
    %c0_i32_0 = arith.constant 0 : i32
    %c0_i32_1 = arith.constant 0 : i32
    %c0_i32_2 = arith.constant 0 : i32
    return %c0_i32, %c0_i32_0, %c0_i32_1 : i32, i32, i32
  }
  func.func @transform_2(%arg0: i32) -> (i32, i32, i32) {
    %c0_i32 = arith.constant 0 : i32
    %c0_i32_0 = arith.constant 0 : i32
    %c0_i32_1 = arith.constant 0 : i32
    %c0_i32_2 = arith.constant 0 : i32
    return %c0_i32, %c0_i32_0, %c0_i32_1 : i32, i32, i32
  }
  func.func @transform_3(%arg0: i32) -> (i32, i32, i32) {
    %c0_i32 = arith.constant 0 : i32
    %c0_i32_0 = arith.constant 0 : i32
    %c0_i32_1 = arith.constant 0 : i32
    %c0_i32_2 = arith.constant 0 : i32
    return %c0_i32, %c0_i32_0, %c0_i32_1 : i32, i32, i32
  }
  func.func @transform_4(%arg0: i32) -> (i32, i32) {
    %c0_i32 = arith.constant 0 : i32
    %c0_i32_0 = arith.constant 0 : i32
    %c0_i32_1 = arith.constant 0 : i32
    return %c0_i32, %c0_i32_0 : i32, i32
  }
  func.func @transform_5(%arg0: i32) -> (i32, i32) {
    %c0_i32 = arith.constant 0 : i32
    %c0_i32_0 = arith.constant 0 : i32
    return %arg0, %c0_i32 : i32, i32
  }
}

</mosaic_0001>

<bundles_post_ra>
// kernel: tpu_custom_call.1
= control target key start
LH: loop header
LB: loop body
LE: loop exit
PB: predicated region body
PF: predicated region fallthrough
CT: control target
= control target key end

     0   :  { %v1126_v1 = vmov 0.0   ;;  %vm1127_vm0 = vmmov 0   ;;  %s1376_s0 = inlined_call_operand.vmem [shape: f32[2,128], index: 0, kind: input, shape index: {}]   ;;  %s1377_s1 = inlined_call_operand.vmem [shape: bf16[4,128,10], index: 1, kind: input, shape index: {}]   ;;  %s1378_s2 = inlined_call_operand.vmem [shape: f32[4,1,10], index: 2, kind: input, shape index: {}]   ;;  %s1379_s3 = inlined_call_operand.vmem [shape: bf16[4,10,256], index: 3, kind: input, shape index: {}]   ;;  %s1380_s4 = inlined_call_operand.vmem [shape: f32[1,256], index: 4, kind: input, shape index: {}]   ;;  %s1381_s5 = inlined_call_operand.hbm [shape: f32[2,256], index: 5, kind: output, shape index: {}]  }
   0x1   :  { %v1042_v0 = vld [vmem:[%s1377_s1 + $0x40] sm:$0xff]   ;;  %978 = vmatprep.subr.bf16.mxu1 %v1126_v1  ;;  %958 = vmatprep.subr.bf16.mxu0 %v1126_v1  ;;  %v1044_v3 = vld [vmem:[%s1377_s1 + $0x48] sm:$0xff]   ;;  %v1046_v5 = vld [vmem:[%s1377_s1 + $0x50] sm:$0xff]  }
   0x2   :  { %v1043_v2 = vld [vmem:[%s1377_s1] sm:$0xff]   ;;  %979 = vmatpush3.bf16.msra.mxu1 %v1042_v0  ;;  %994 = vmatprep.mubr.msk.bf16.mxu1 %vm1127_vm0, %v1126_v1  ;;  %v1045_v4 = vld [vmem:[%s1377_s1 + $0x8] sm:$0xff]   ;;  %v1047_v6 = vld [vmem:[%s1377_s1 + $0x10] sm:$0xff]  }
   0x3   :  { %980 = vmatprep.subr.bf16.mxu1 %v1126_v1  ;;  %959 = vmatpush3.bf16.msra.mxu0 %v1043_v2  ;;  %v1048_v7 = vld [vmem:[%s1377_s1 + $0x58] sm:$0xff]   ;;  %v1050_v9 = vld [vmem:[%s1377_s1 + $0x60] sm:$0xff]   ;;  %v1052_v11 = vld [vmem:[%s1377_s1 + $0x68] sm:$0xff]  }
   0x4   :  { %960 = vmatprep.subr.bf16.mxu0 %v1126_v1  ;;  %974 = vmatprep.mubr.msk.bf16.mxu0 %vm1127_vm0, %v1126_v1  ;;  %v1049_v8 = vld [vmem:[%s1377_s1 + $0x18] sm:$0xff]   ;;  %v1051_v10 = vld [vmem:[%s1377_s1 + $0x20] sm:$0xff]   ;;  %v1053_v12 = vld [vmem:[%s1377_s1 + $0x28] sm:$0xff]  }
   0x5   :  { %v1054_v13 = vld [vmem:[%s1377_s1 + $0x70] sm:$0xff]   ;;  %v1056_v15 = vld [vmem:[%s1377_s1 + $0x78] sm:$0xff]   ;;  %v22_v16 = vld [vmem:[%s1376_s0] sm:$0x3] }
   0x6   :  { %981 = vmatpush3.bf16.msra.mxu1 %v1044_v3  ;;  %v1055_v14 = vld [vmem:[%s1377_s1 + $0x30] sm:$0xff]   ;;  %v1057_v17 = vld [vmem:[%s1377_s1 + $0x38] sm:$0xff]   ;;  %v1231_v18 = vpack.c.bf16 %v22_v16, %v22_v16 }
   0x7   :  { %982 = vmatprep.subr.bf16.mxu1 %v1126_v1  ;;  %961 = vmatpush3.bf16.msra.mxu0 %v1045_v4 }
   0x8   :  { %962 = vmatprep.subr.bf16.mxu0 %v1126_v1 }
   0xa   :  { %983 = vmatpush3.bf16.msra.mxu1 %v1046_v5 }
   0xb   :  { %984 = vmatprep.subr.bf16.mxu1 %v1126_v1  ;;  %963 = vmatpush3.bf16.msra.mxu0 %v1047_v6 }
   0xc   :  { %964 = vmatprep.subr.bf16.mxu0 %v1126_v1 }
   0xe   :  { %985 = vmatpush3.bf16.msra.mxu1 %v1048_v7 }
   0xf   :  { %986 = vmatprep.subr.bf16.mxu1 %v1126_v1  ;;  %965 = vmatpush3.bf16.msra.mxu0 %v1049_v8 }
  0x10   :  { %966 = vmatprep.subr.bf16.mxu0 %v1126_v1 }
  0x12   :  { %987 = vmatpush3.bf16.msra.mxu1 %v1050_v9 }
  0x13   :  { %988 = vmatprep.subr.bf16.mxu1 %v1126_v1  ;;  %967 = vmatpush3.bf16.msra.mxu0 %v1051_v10 }
  0x14   :  { %968 = vmatprep.subr.bf16.mxu0 %v1126_v1 }
  0x16   :  { %989 = vmatpush3.bf16.msra.mxu1 %v1052_v11 }
  0x17   :  { %990 = vmatprep.subr.bf16.mxu1 %v1126_v1  ;;  %969 = vmatpush3.bf16.msra.mxu0 %v1053_v12 }
  0x18   :  { %970 = vmatprep.subr.bf16.mxu0 %v1126_v1 }
  0x1a   :  { %991 = vmatpush3.bf16.msra.mxu1 %v1054_v13 }
  0x1b   :  { %992 = vmatprep.subr.bf16.mxu1 %v1126_v1  ;;  %971 = vmatpush3.bf16.msra.mxu0 %v1055_v14 }
  0x1c   :  { %972 = vmatprep.subr.bf16.mxu0 %v1126_v1 }
  0x1e   :  { %993 = vmatpush3.bf16.msra.mxu1 %v1056_v15 }
  0x1f   :  { %10 = vsyncpa [#allocation3], 0  ;;  %973 = vmatpush3.bf16.msra.mxu0 %v1057_v17  ;;  %v838_v19 = vld [vmem:[%s1378_s2 + $0x1] ss:$0 sm:$0xff]  ;;  %v812_v20 = vld [vmem:[%s1378_s2] ss:$0 sm:$0xff] }
  0x20   :  { %vm135_vm1 = vcmask 74752   ;;  %v1058_v43 = vld [vmem:[%s1379_s3 + $0x14] ss:$8 sps:$4 sm:$0x1f]   ;;  %vm290_vm2 = vcmask 1044480   ;;  %v1128_v47 = vmov 0  }
  0x21   :  { %995 = vmatmul.mubr.bf16.vlgmr.msra.gmra.mrb[0].mxu1 %v1231_v18  ;;  %v1060_v44 = vld [vmem:[%s1379_s3 + $0x10] ss:$8 sps:$4 sm:$0x1f]   ;;  %851 = vmatprep.subr.msk.bf16.mxu0 %vm290_vm2, %v1058_v43  ;;  %v1061_v46 = vld [vmem:[%s1379_s3 + $0x4] ss:$8 sps:$4 sm:$0x1f]  }
  0x22   :  { %975 = vmatmul.mubr.bf16.vlgmr.msra.gmra.mrb[0].mxu0 %v1231_v18  ;;  %v292_v45 = vsel %vm290_vm2, %v1060_v44, 0  ;;  %v1064_v48 = vld [vmem:[%s1379_s3] ss:$8 sps:$4 sm:$0x1f]   ;;  %387 = vmatprep.mubr.bf16.mxu1 %v1128_v47  ;;  %vm286_vm3 = vcmask 80896   ;;  %v1066_v60 = vld [vmem:[%s1377_s1 + $0x90] sm:$0xff]  }
  0x23   :  { %298 = vmatpush1.bf16.msra.mxu0 %v292_v45  ;;  %329 = vmatprep.mubr.bf16.mxu0 %v1128_v47  ;;  %v350_v49 = vsel %vm290_vm2, %v1064_v48, 0  ;;  %v1063_v54 = vld [vmem:[%s1377_s1 + $0x80] sm:$0xff]   ;;  %v1065_v58 = vld [vmem:[%s1377_s1 + $0x88] sm:$0xff]   ;;  %v1067_v61 = vld [vmem:[%s1377_s1 + $0x98] sm:$0xff]  }
  0x24   :  { %998 = vmatprep.subr.bf16.mxu0 %v1126_v1  ;;  %855 = vmatprep.subr.msk.bf16.mxu1 %vm290_vm2, %v1061_v46  ;;  %v1068_v62 = vld [vmem:[%s1377_s1 + $0xa0] sm:$0xff]   ;;  %v1069_v63 = vld [vmem:[%s1377_s1 + $0xa8] sm:$0xff]   ;;  %v1070_v0 = vld [vmem:[%s1377_s1 + $0xb0] sm:$0xff]  }
  0x25   :  { %356 = vmatpush1.bf16.msra.mxu1 %v350_v49  ;;  %v1071_v2 = vld [vmem:[%s1377_s1 + $0xb8] sm:$0xff]   ;;  %v874_v13 = vld [vmem:[%s1378_s2 + $0x2] ss:$0 sm:$0xff] }
  0xf4   :  { %v257_v21 = vpop.f32.mrb[0].mxu1 }
  0xf5   :  { %v258_v22 = vadd.f32 %v838_v19, %v257_v21  ;;  %v996_v23 = vpop.f32.mrb[1].mxu1  ;;  %v129_v24 = vpop.f32.mrb[0].mxu0 }
  0xf6   :  { %v260_v25 = vpop.f32.mrb[2].mxu1  ;;  %v130_v26 = vadd.f32 %v812_v20, %v129_v24  ;;  %v976_v27 = vpop.f32.mrb[1].mxu0 }
  0xf7   :  { %v997_v28 = vpop.f32.mrb[3].mxu1  ;;  %v263_v29 = vsel %vm135_vm1, %v258_v22, -inf  ;;  %v132_v30 = vpop.f32.mrb[2].mxu0  ;;  %v1074_v27 = vld [vmem:[%s1379_s3 + $0x20] ss:$8 sps:$4 sm:$0x1f]  }
  0xf8   :  { %264 = vmax.xlane.f32.xlu0 %v263_v29  ;;  %v136_v31 = vsel %vm135_vm1, %v130_v26, -inf  ;;  %v977_v32 = vpop.f32.mrb[3].mxu0  ;;  %v536_v28 = vsel %vm290_vm2, %v1074_v27, 0 }
  0xf9   :  { %137 = vmax.xlane.f32.xlu1 %v136_v31  ;;  %v1075_v32 = vld [vmem:[%s1377_s1 + $0xc0] sm:$0xff]  }
 0x185   :  { %v265_v33 = vpop.xlane.xlu0 %264 }
 0x186   :  { %v266_v34 = vsub.f32 %v258_v22, %v265_v33  ;;  %v138_v35 = vpop.xlane.xlu1 %137 }
 0x187   :  { %v139_v36 = vsub.f32 %v130_v26, %v138_v35  ;;  %v1072_v26 = vld [vmem:[%s1379_s3 + $0x24] ss:$8 sps:$4 sm:$0x1f]   ;;  %v1077_v35 = vld [vmem:[%s1377_s1 + $0xd0] sm:$0xff]  }
 0x188   :  { %v267_v37 = vmul.f32 1.442695, %v266_v34  ;;  %887 = vmatprep.subr.msk.bf16.mxu1 %vm290_vm2, %v1072_v26  ;;  %v1076_v34 = vld [vmem:[%s1377_s1 + $0xc8] sm:$0xff]  }
 0x189   :  { %v140_v38 = vmul.f32 1.442695, %v139_v36  ;;  %v1078_v36 = vld [vmem:[%s1377_s1 + $0xd8] sm:$0xff]  }
 0x18a   :  { %1086 = vpow2.f32 %v267_v37  ;;  %v1079_v37 = vld [vmem:[%s1377_s1 + $0xe0] sm:$0xff]  }
 0x18b   :  { %1088 = vpow2.f32 %v140_v38  ;;  %v1080_v38 = vld [vmem:[%s1377_s1 + $0xe8] sm:$0xff]  }
 0x194   :  { %v1087_v39 = vpop.eup %1086 }
 0x195   :  { %v1089_v40 = vpop.eup %1088  ;;  %v269_v41 = vsel %vm135_vm1, %v1087_v39, 0.0 }
 0x196   :  { %270 = vadd.xlane.f32.xlu0 %v269_v41  ;;  %v142_v42 = vsel %vm135_vm1, %v1089_v40, 0.0 }
 0x19a   :  { %143 = vadd.xlane.f32.xlu0 %v142_v42 }
 0x223   :  { %v271_v50 = vpop.xlane.xlu0 %270 }
 0x224   :  { %1090 = vrcp.f32 %v271_v50 }
 0x227   :  { %v144_v51 = vpop.xlane.xlu0 %143 }
 0x228   :  { %1092 = vrcp.f32 %v144_v51 }
 0x22e   :  { %v1091_v52 = vpop.eup %1090 }
 0x22f   :  { %v273_v53 = vmul.f32 %v1091_v52, %v1087_v39  ;;  %v1081_v39 = vld [vmem:[%s1377_s1 + $0xf0] sm:$0xff]  }
 0x231   :  { %v274_v55 = vpack.c.bf16 %v273_v53, %v273_v53 }
 0x232   :  { %v1093_v56 = vpop.eup %1092 }
 0x233   :  { %v146_v57 = vmul.f32 %v1093_v56, %v1089_v40  ;;  %852 = vmatmul.mubr.msk.bf16.vlgmr.msra.gmra.mrb[4].mxu0 %vm286_vm3, %v274_v55  ;;  %v1082_v40 = vld [vmem:[%s1377_s1 + $0xf8] sm:$0xff]  }
 0x234   :  { %999 = vmatpush3.bf16.msra.mxu0 %v1063_v54  ;;  %1014 = vmatprep.mubr.msk.bf16.mxu0 %vm1127_vm0, %v1126_v1 }
 0x235   :  { %1000 = vmatprep.subr.bf16.mxu0 %v1126_v1  ;;  %v147_v59 = vpack.c.bf16 %v146_v57, %v146_v57  ;;  %v1083_v57 = vld [vmem:[%s1379_s3 + $0x34] ss:$8 sps:$4 sm:$0x1f]  }
 0x237   :  { %856 = vmatmul.mubr.msk.bf16.vlgmr.msra.gmra.mrb[4].mxu1 %vm286_vm3, %v147_v59 }
 0x238   :  { %1001 = vmatpush3.bf16.msra.mxu0 %v1065_v58  ;;  %573 = vmatprep.mubr.bf16.mxu1 %v1128_v47  ;;  %v1085_v58 = vld [vmem:[%s1379_s3 + $0x30] ss:$8 sps:$4 sm:$0x1f]   ;;  %s1129_s3 = smov [#allocation2]  }
 0x239   :  { %1002 = vmatprep.subr.bf16.mxu0 %v1126_v1  ;;  %542 = vmatpush1.bf16.msra.mxu1 %v536_v28  ;;  %v724_v59 = vsel %vm290_vm2, %v1085_v58, 0  ;;  %s804_s30 = sshll.u32 %s1129_s3, 4  ;;  %s805_s30 = int_to_ptr.vmem [resolvable:$true] %s804_s30 }
 0x23a   :  { %1018 = vmatprep.subr.bf16.mxu1 %v1126_v1  ;;  %s1102_s6 = scalar_lea.vmem %s805_s30, 64  ;;  %p1107_p1 = scmp.lt.s32.totalorder %s805_s30, %s805_s30 }
 0x23b   :  { %p1103_p0 = scmp.ne.s32.totalorder %s805_s30, %s1102_s6  ;;  %p1108_p2 = scmp.lt.s32.totalorder %s1102_s6, %s1102_s6 }
 0x23c   :  { %1003 = vmatpush3.bf16.msra.mxu0 %v1066_v60 }
 0x23d   :  { %1004 = vmatprep.subr.bf16.mxu0 %v1126_v1  ;;  %p1109_p3 = por %p1108_p2, %p1107_p1 }
 0x23f   :  { %p1110_p4 = pnand %p1109_p3, %p1103_p0 }
 0x240   :  { %1005 = vmatpush3.bf16.msra.mxu0 %v1067_v61 }
 0x241   :  { %1006 = vmatprep.subr.bf16.mxu0 %v1126_v1 }
 0x244   :  { %1007 = vmatpush3.bf16.msra.mxu0 %v1068_v62 }
 0x245   :  { %1008 = vmatprep.subr.bf16.mxu0 %v1126_v1 }
 0x248   :  { %1009 = vmatpush3.bf16.msra.mxu0 %v1069_v63 }
 0x249   :  { %1010 = vmatprep.subr.bf16.mxu0 %v1126_v1 }
 0x24c   :  { %1011 = vmatpush3.bf16.msra.mxu0 %v1070_v0  ;;  %v774_v0 = vlaneseq }
 0x24d   :  { %1012 = vmatprep.subr.bf16.mxu0 %v1126_v1 }
 0x250   :  { %1013 = vmatpush3.bf16.msra.mxu0 %v1071_v2  ;;  %v775_v2 = vshrl.u32 %v774_v0, 7 }
 0x251   :  { %919 = vmatprep.subr.msk.bf16.mxu0 %vm290_vm2, %v1083_v57 }
 0x253   :  { %1015 = vmatmul.mubr.bf16.vlgmr.msra.gmra.mrb[8].mxu0 %v1231_v18 }
 0x254   :  { %761 = vmatprep.mubr.bf16.mxu0 %v1128_v47  ;;  %v906_v47 = vld [vmem:[%s1378_s2 + $0x3] ss:$0 sm:$0xff]  ;;  %730 = vmatpush1.bf16.msra.mxu0 %v724_v59 }
 0x306   :  { %v331_v3 = vpop.f32.mrb[4].mxu0 }
 0x307   :  { %v333_v4 = vpop.f32.mrb[5].mxu0 }
 0x308   :  { %v335_v5 = vpop.f32.mrb[6].mxu0 }
 0x309   :  { %v336_v6 = vpop.f32.mrb[7].mxu0  ;;  %v780_v5 = vsub.s32 1, %v775_v2 }
 0x30a   :  { %v389_v7 = vpop.f32.mrb[4].mxu1 }
 0x30b   :  { %v390_v8 = vadd.f32 %v389_v7, %v331_v3  ;;  %v391_v9 = vpop.f32.mrb[5].mxu1  ;;  %v776_v3 = vsub.s32 0, %v775_v2 }
 0x30c   :  { %v392_v10 = vadd.f32 %v391_v9, %v333_v4  ;;  %v393_v11 = vpop.f32.mrb[6].mxu1  ;;  %v772_v4 = vld [vmem:[%s1380_s4] sm:$0x3] }
 0x30d   :  { %v394_v12 = vpop.f32.mrb[7].mxu1  ;;  %v777_v6 = vrot.slane %v772_v4, %v776_v3 }
 0x326   :  { %v503_v14 = vpop.f32.mrb[8].mxu0 }
 0x327   :  { %v504_v15 = vadd.f32 %v874_v13, %v503_v14  ;;  %v1016_v16 = vpop.f32.mrb[9].mxu0 }
 0x328   :  { %v506_v17 = vpop.f32.mrb[10].mxu0 }
 0x329   :  { %v1017_v19 = vpop.f32.mrb[11].mxu0  ;;  %v509_v20 = vsel %vm135_vm1, %v504_v15, -inf }
 0x32a   :  { %510 = vmax.xlane.f32.xlu1 %v509_v20 }
 0x3b7   :  { %v511_v21 = vpop.xlane.xlu1 %510 }
 0x3b8   :  { %v512_v22 = vsub.f32 %v504_v15, %v511_v21 }
 0x3ba   :  { %v513_v23 = vmul.f32 1.442695, %v512_v22 }
 0x3bc   :  { %1094 = vpow2.f32 %v513_v23 }
 0x3c6   :  { %v1095_v24 = vpop.eup %1094 }
 0x3c7   :  { %v515_v25 = vsel %vm135_vm1, %v1095_v24, 0.0 }
 0x3c8   :  { %516 = vadd.xlane.f32.xlu1 %v515_v25 }
 0x455   :  { %v517_v29 = vpop.xlane.xlu1 %516 }
 0x456   :  { %1096 = vrcp.f32 %v517_v29 }
 0x460   :  { %v1097_v30 = vpop.eup %1096 }
 0x461   :  { %v519_v31 = vmul.f32 %v1097_v30, %v1095_v24 }
 0x463   :  { %v520_v33 = vpack.c.bf16 %v519_v31, %v519_v31 }
 0x465   :  { %888 = vmatmul.mubr.msk.bf16.vlgmr.msra.gmra.mrb[8].mxu1 %vm286_vm3, %v520_v33 }
 0x466   :  { %1019 = vmatpush3.bf16.msra.mxu1 %v1075_v32  ;;  %1034 = vmatprep.mubr.msk.bf16.mxu1 %vm1127_vm0, %v1126_v1 }
 0x467   :  { %1020 = vmatprep.subr.bf16.mxu1 %v1126_v1 }
 0x46a   :  { %1021 = vmatpush3.bf16.msra.mxu1 %v1076_v34 }
 0x46b   :  { %1022 = vmatprep.subr.bf16.mxu1 %v1126_v1 }
 0x46e   :  { %1023 = vmatpush3.bf16.msra.mxu1 %v1077_v35 }
 0x46f   :  { %1024 = vmatprep.subr.bf16.mxu1 %v1126_v1 }
 0x472   :  { %1025 = vmatpush3.bf16.msra.mxu1 %v1078_v36 }
 0x473   :  { %1026 = vmatprep.subr.bf16.mxu1 %v1126_v1 }
 0x476   :  { %1027 = vmatpush3.bf16.msra.mxu1 %v1079_v37 }
 0x477   :  { %1028 = vmatprep.subr.bf16.mxu1 %v1126_v1 }
 0x47a   :  { %1029 = vmatpush3.bf16.msra.mxu1 %v1080_v38 }
 0x47b   :  { %1030 = vmatprep.subr.bf16.mxu1 %v1126_v1 }
 0x47e   :  { %1031 = vmatpush3.bf16.msra.mxu1 %v1081_v39 }
 0x47f   :  { %1032 = vmatprep.subr.bf16.mxu1 %v1126_v1 }
 0x482   :  { %1033 = vmatpush3.bf16.msra.mxu1 %v1082_v40 }
 0x485   :  { %1035 = vmatmul.mubr.bf16.vlgmr.msra.gmra.mrb[12].mxu1 %v1231_v18 }
 0x538   :  { %v575_v41 = vpop.f32.mrb[8].mxu1 }
 0x539   :  { %v582_v42 = vadd.f32 %v575_v41, %v390_v8  ;;  %v577_v43 = vpop.f32.mrb[9].mxu1  ;;  %v781_v8 = vrot.slane %v772_v4, %v780_v5 }
 0x53a   :  { %v583_v44 = vadd.f32 %v577_v43, %v392_v10  ;;  %v579_v45 = vpop.f32.mrb[10].mxu1 }
 0x53b   :  { %v580_v46 = vpop.f32.mrb[11].mxu1 }
 0x558   :  { %v691_v48 = vpop.f32.mrb[12].mxu1 }
 0x559   :  { %v692_v49 = vadd.f32 %v906_v47, %v691_v48  ;;  %v1036_v50 = vpop.f32.mrb[13].mxu1 }
 0x55a   :  { %v694_v51 = vpop.f32.mrb[14].mxu1 }
 0x55b   :  { %v1037_v52 = vpop.f32.mrb[15].mxu1  ;;  %v697_v1 = vsel %vm135_vm1, %v692_v49, -inf }
 0x55c   :  { %698 = vmax.xlane.f32.xlu0 %v697_v1 }
 0x5e9   :  { %v699_v53 = vpop.xlane.xlu0 %698 }
 0x5ea   :  { %v700_v18 = vsub.f32 %v692_v49, %v699_v53 }
 0x5ec   :  { %v701_v54 = vmul.f32 1.442695, %v700_v18 }
 0x5ee   :  { %1098 = vpow2.f32 %v701_v54 }
 0x5f8   :  { %v1099_v55 = vpop.eup %1098 }
 0x5f9   :  { %v703_v56 = vsel %vm135_vm1, %v1099_v55, 0.0 }
 0x5fa   :  { %704 = vadd.xlane.f32.xlu1 %v703_v56 }
 0x687   :  { %v705_v60 = vpop.xlane.xlu1 %704 }
 0x688   :  { %1100 = vrcp.f32 %v705_v60 }
 0x692   :  { %v1101_v61 = vpop.eup %1100 }
 0x693   :  { %v707_v62 = vmul.f32 %v1101_v61, %v1099_v55 }
 0x695   :  { %v708_v63 = vpack.c.bf16 %v707_v62, %v707_v62 }
 0x697   :  { %920 = vmatmul.mubr.msk.bf16.vlgmr.msra.gmra.mrb[12].mxu0 %vm286_vm3, %v708_v63 }
 0x76a   :  { %v763_v7 = vpop.f32.mrb[12].mxu0 }
 0x76b   :  { %v770_v9 = vadd.f32 %v763_v7, %v582_v42  ;;  %v765_v10 = vpop.f32.mrb[13].mxu0 }
 0x76c   :  { %v771_v11 = vadd.f32 %v765_v10, %v583_v44  ;;  %v767_v12 = vpop.f32.mrb[14].mxu0 }
 0x76d   :  { %v784_v13 = vadd.f32 %v777_v6, %v770_v9  ;;  %v768_v14 = vpop.f32.mrb[15].mxu0 }
 0x76e   :  { %v785_v15 = vadd.f32 %v781_v8, %v771_v11 }
 0x770   :  { %v788_v16 = vcombine.low %v784_v13, %v785_v15 }
 0x772   :  { %921 = vst.sshfl [vmem:[#allocation2] sm:$0x33 pattern:$0x76325410] %v788_v16 }
 0x773   :  { %1113 = shalt.err (!%p1110_p4)
}
 0x774   :  { %s1114_s8 = scalar_lea.hbm %s1381_s5, 64 }
 0x775   :  { %p1115_p5 = scmp.ne.s32.totalorder %s1381_s5, %s1114_s8  ;;  %p1118_p6 = scmp.lt.u32.totalorder %s1114_s8, %s1381_s5 }
 0x777   :  { %p1120_p7 = pnand %p1118_p6, %p1115_p5 }
 0x779   :  { %1123 = shalt.err (!%p1120_p7)
}
 0x77a   :  { %807 = dma.vmem_to_hbm [thread:$0]  %s805_s30, 64, %s1381_s5, [#allocation3]  }
 0x77b   :  { %1124 = dma.done.wait [#allocation3], 64  }
 0x77c   :  { %1125 = vsyncadd [#allocation3], 4294967232 }
 0x77d   :  { %811 = vsyncpa [#allocation3], 1 }

</bundles_post_ra>
